<compile_context>
chip_gen: v6e
topology: v6e:2x2x1
jax: 0.10.0
libtpu: 0.0.40
codegen_flags: <defaults>
</compile_context>

<pallas_src>
import math
from functools import partial

import jax
import jax.numpy as jnp
import numpy as np
from jax.experimental import pallas as pl
from jax.experimental.pallas import tpu as pltpu


D_MODEL = 64
MAX_LEN = 5000


def _build_pe(max_len: int, d_model: int) -> jnp.ndarray:
    """Deterministic sin/cos positional-encoding table, shape [max_len, d_model]."""
    position = np.arange(0, max_len, dtype=np.float32)[:, None]              # [L, 1]
    div_term = np.exp(
        np.arange(0, d_model, 2, dtype=np.float32) * (-math.log(10000.0) / d_model)
    )                                                                        # [D/2]
    pe = np.zeros((max_len, d_model), dtype=np.float32)
    pe[:, 0::2] = np.sin(position * div_term)
    pe[:, 1::2] = np.cos(position * div_term)
    return jnp.asarray(pe)                                                   # [L, D]


def _pos_enc_kernel(x_ref, pe_ref, o_ref, *, batch: int):
    # x_ref / o_ref: [TS, batch*d_model]   pe_ref: [TS, d_model]
    # Broadcast pe over batch by tiling along lanes (lane index = b*d_model + k in the
    # [seq, batch, d_model] row-major view), then one elementwise VPU add.
    pe_wide = jnp.tile(pe_ref[...], (1, batch))                              # [TS, B*D]
    o_ref[...] = (x_ref[...] + pe_wide.astype(x_ref.dtype)).astype(o_ref.dtype)


def positional_encoding(x: jnp.ndarray, pe_full: jnp.ndarray) -> jnp.ndarray:
    """x: [seq_len, batch, d_model] -> x + pe[:seq_len] (dropout is eval-mode identity)."""
    seq_len, batch, d_model = x.shape
    assert pe_full.shape[1] == d_model and pe_full.shape[0] >= seq_len

    lanes = batch * d_model
    x2d = x.reshape(seq_len, lanes)                                          # lane-dense view

    itemsize = jnp.dtype(x.dtype).itemsize
    row_bytes = lanes * itemsize

    # ~2 MiB x-tiles: large enough to hit the HBM roofline (per-step overhead ~0.35 us),
    # small enough to double-buffer comfortably on every chip's VMEM.
    ts = max(8, ((2 << 20) // max(row_bytes, 1)) // 8 * 8)                   # multiple of 8
    seq_pad = pl.cdiv(seq_len, 8) * 8
    ts = int(min(ts, 2048, max(8, seq_pad)))
    grid = (pl.cdiv(seq_len, ts),)

    # Double-buffered VMEM footprint: x-in, out, pe (2 buffers each) + headroom.
    x_tile_b = ts * lanes * itemsize
    pe_tile_b = ts * d_model * jnp.dtype(pe_full.dtype).itemsize
    vmem_need = 2 * x_tile_b + 2 * x_tile_b + 2 * pe_tile_b
    vmem_limit = int(min(100 << 20, max(vmem_need + (4 << 20), 16 << 20)))

    out2d = pl.pallas_call(
        partial(_pos_enc_kernel, batch=batch),
        out_shape=jax.ShapeDtypeStruct((seq_len, lanes), x.dtype),
        grid_spec=pl.GridSpec(
            grid=grid,
            in_specs=[
                pl.BlockSpec((ts, lanes), lambda i: (i, 0)),        # x tile
                pl.BlockSpec((ts, d_model), lambda i: (i, 0)),      # pe window (full table)
            ],
            out_specs=pl.BlockSpec((ts, lanes), lambda i: (i, 0)),
        ),
        compiler_params=pltpu.CompilerParams(
            dimension_semantics=("parallel",),      # independent seq tiles -> v7x dual-TC
            vmem_limit_bytes=vmem_limit,
        ),
    )(x2d, pe_full)

    # nn.Dropout in eval mode is the identity.
    return out2d.reshape(seq_len, batch, d_model)


if __name__ == "__main__":
    pe_full = _build_pe(MAX_LEN, D_MODEL)

    # Primary check (module-consistent small shapes).
    key = jax.random.PRNGKey(0)
    seq_len, batch = 8, 2
    x = jax.random.normal(key, (seq_len, batch, D_MODEL), dtype=jnp.float32)
    y = jax.block_until_ready(positional_encoding(x, pe_full))
    y_ref = x + pe_full[:seq_len][:, None, :]
    assert y.shape == (seq_len, batch, D_MODEL)
    np.testing.assert_allclose(np.asarray(y), np.asarray(y_ref), rtol=1e-6, atol=1e-6)

    # Secondary check: multi-tile grid + partial last block (seq not a multiple of tile).
    key2 = jax.random.PRNGKey(1)
    seq_len2, batch2 = 2500, 4
    x2 = jax.random.normal(key2, (seq_len2, batch2, D_MODEL), dtype=jnp.float32)
    y2 = jax.block_until_ready(positional_encoding(x2, pe_full))
    y2_ref = x2 + pe_full[:seq_len2][:, None, :]
    np.testing.assert_allclose(np.asarray(y2), np.asarray(y2_ref), rtol=1e-6, atol=1e-6)

    print("KERNEL_OK")
</pallas_src>

<mosaic_0001>
module attributes {stable_mosaic.version = 11 : i64} {
  func.func @_pos_enc_kernel(%arg0: i32, %arg1: memref<8x128xf32, #tpu.memory_space<vmem>>, %arg2: memref<8x64xf32, #tpu.memory_space<vmem>>, %arg3: memref<8x128xf32, #tpu.memory_space<vmem>>) attributes {dimension_semantics = [#tpu.dimension_semantics<parallel>], iteration_bounds = array<i64: 1>, scalar_prefetch = 0 : i64, scratch_operands = 0 : i64, tpu.core_type = #tpu.core_type<tc>, window_params = [{transform_indices = @transform_0, window_bounds = array<i64: 8, 128>}, {transform_indices = @transform_1, window_bounds = array<i64: 8, 64>}, {transform_indices = @transform_2, window_bounds = array<i64: 8, 128>}]} {
    %c0 = arith.constant 0 : index
    %c0_0 = arith.constant 0 : index
    %0 = vector.load %arg2[%c0, %c0_0] : memref<8x64xf32, #tpu.memory_space<vmem>>, vector<8x64xf32>
    %1 = tpu.concatenate %0, %0 in 1 : vector<8x64xf32>, vector<8x64xf32> -> vector<8x128xf32>
    %c0_1 = arith.constant 0 : index
    %c0_2 = arith.constant 0 : index
    %2 = vector.load %arg1[%c0_1, %c0_2] : memref<8x128xf32, #tpu.memory_space<vmem>>, vector<8x128xf32>
    %3 = arith.addf %2, %1 : vector<8x128xf32>
    %c0_3 = arith.constant 0 : index
    %c0_4 = arith.constant 0 : index
    %4 = vector.load %arg3[%c0_3, %c0_4] : memref<8x128xf32, #tpu.memory_space<vmem>>, vector<8x128xf32>
    tpu.vector_store %arg3[%c0_3, %c0_4], %3 {strides = array<i32>} : memref<8x128xf32, #tpu.memory_space<vmem>>, vector<8x128xf32>,
    return
  }
  func.func @transform_0(%arg0: i32) -> (i32, i32) {
    %c0_i32 = arith.constant 0 : i32
    %c0_i32_0 = arith.constant 0 : i32
    return %arg0, %c0_i32 : i32, i32
  }
  func.func @transform_1(%arg0: i32) -> (i32, i32) {
    %c0_i32 = arith.constant 0 : i32
    %c0_i32_0 = arith.constant 0 : i32
    return %arg0, %c0_i32 : i32, i32
  }
  func.func @transform_2(%arg0: i32) -> (i32, i32) {
    %c0_i32 = arith.constant 0 : i32
    %c0_i32_0 = arith.constant 0 : i32
    return %arg0, %c0_i32 : i32, i32
  }
}

</mosaic_0001>

<bundles_post_ra>
// kernel: tpu_custom_call.1
= control target key start
LH: loop header
LB: loop body
LE: loop exit
PB: predicated region body
PF: predicated region fallthrough
CT: control target
= control target key end

     0   :  { %s86_s0 = inlined_call_operand.vmem [shape: f32[8,128], index: 0, kind: input, shape index: {}]   ;;  %s87_s1 = inlined_call_operand.vmem [shape: f32[5000,64], index: 1, kind: input, shape index: {}]   ;;  %s88_s2 = inlined_call_operand.hbm [shape: f32[8,128], index: 2, kind: output, shape index: {}]  }
   0x1   :  { %v12_v0 = vld [vmem:[%s87_s1] sm:$0xff] }
   0x2   :  { %7 = vsyncpa [#allocation3], 0  ;;  %s60_s11 = smov 64   ;;  %vm17_vm0 = vcmask 523264   ;;  %v19_v1 = vld [vmem:[%s86_s0] sm:$0xff]  ;;  %s61_s14 = smov [#allocation2]  }
   0x3   :  { %14 = vrot.lane.b32.xlu0 %v12_v0, %s60_s11  ;;  %s28_s15 = sshll.u32 %s61_s14, 4  ;;  %s29_s15 = int_to_ptr.vmem [resolvable:$true] %s28_s15 }
   0x4   :  { %s38_s16 = scalar_lea.vmem %s29_s15, 128  ;;  %p43_p1 = scmp.lt.s32.totalorder %s29_s15, %s29_s15 }
   0x5   :  { %p39_p0 = scmp.ne.s32.totalorder %s29_s15, %s38_s16  ;;  %p44_p2 = scmp.lt.s32.totalorder %s38_s16, %s38_s16 }
   0x7   :  { %p45_p3 = por %p44_p2, %p43_p1 }
   0x9   :  { %p46_p4 = pnand %p45_p3, %p39_p0 }
  0x75   :  { %v15_v2 = vpop.permute.xlu0 %14 }
  0x76   :  { %v18_v3 = vsel %vm17_vm0, %v12_v0, %v15_v2 }
  0x77   :  { %v20_v4 = vadd.f32 %v19_v1, %v18_v3 }
  0x79   :  { %21 = vst [vmem:[#allocation2] sm:$0xff] %v20_v4 }
  0x7a   :  { %49 = shalt.err (!%p46_p4)
}
  0x7b   :  { %31 = dma.vmem_to_hbm [thread:$0]  %s29_s15, 128, %s88_s2, [#allocation3]  }
  0x7c   :  { %58 = dma.done.wait [#allocation3], 128  }
  0x7d   :  { %59 = vsyncadd [#allocation3], 4294967168 }
  0x7e   :  { %35 = vsyncpa [#allocation3], 1 }

</bundles_post_ra>
